<compile_context>
chip_gen: v7x
topology: tpu7x:2x2x1
jax: 0.10.0
libtpu: 0.0.40
codegen_flags: <defaults>
</compile_context>

<pallas_src>
from typing import NamedTuple

import jax
import jax.numpy as jnp
from jax.experimental import pallas as pl
from jax.experimental.pallas import tpu as pltpu

LANE = 128      # lane width: keep last dims of tiles multiples of this (or full)
SUBLANE = 16    # bf16 sublane packing: batch tiles that split B are multiples of 16


def _round_up(x, m):
    return ((x + m - 1) // m) * m


# ----------------------------------------------------------------------------------
# Kernel body: relu(x@W1+b1) -> relu(.@W2+b2) -> .@W3+b3   (dropout = identity, eval)
# ----------------------------------------------------------------------------------
def mlp_kernel(x_ref, w1_ref, b1_ref, w2_ref, b2_ref, w3_ref, b3_ref, o_ref):
    # In-kernel bf16 cast of the activation tile (VPU work, hidden under MXU/DMA).
    x = x_ref[...].astype(jnp.bfloat16)
    # fc1 + ReLU: bf16 operands, f32 accumulation on the MXU.
    h1 = jnp.dot(x, w1_ref[...], preferred_element_type=jnp.float32)
    h1 = jnp.maximum(h1 + b1_ref[...], 0.0).astype(jnp.bfloat16)
    # fc2 + ReLU  (dropout2 identity in eval mode)
    h2 = jnp.dot(h1, w2_ref[...], preferred_element_type=jnp.float32)
    h2 = jnp.maximum(h2 + b2_ref[...], 0.0).astype(jnp.bfloat16)
    # fc3 (logits). Output lanes are zero-padded to 128 (lane-dense full vst);
    # stored in bf16, wrapper slices/upcasts.
    logits = jnp.dot(h2, w3_ref[...], preferred_element_type=jnp.float32)
    o_ref[...] = (logits + b3_ref[...]).astype(o_ref.dtype)


# ----------------------------------------------------------------------------------
# One-time parameter preparation (do NOT call per forward step / inside jit loops).
# ----------------------------------------------------------------------------------
class EntityModelParams(NamedTuple):
    w1: jax.Array   # (in_dim, hid)      bf16
    b1: jax.Array   # (1, hid)           f32
    w2: jax.Array   # (hid, hid2)        bf16
    b2: jax.Array   # (1, hid2)          f32
    w3: jax.Array   # (hid2, ncls_pad)   bf16, lane-padded to 128
    b3: jax.Array   # (1, ncls_pad)      f32, lane-padded to 128
    num_classes: int


def prepare_params(w1, b1, w2, b2, w3, b3):
    """Convert weights once: bf16 (in,out) weights, f32 (1,out) biases, fc3 padded
    to a lane-dense 128-wide output. Accepts PyTorch-style 1-D biases."""
    def bias_2d(b):
        b = jnp.asarray(b, jnp.float32)
        return b.reshape(1, -1)                      # guard: (out,) -> (1, out)

    w1 = jnp.asarray(w1); w2 = jnp.asarray(w2); w3 = jnp.asarray(w3)
    ncls = w3.shape[1]
    ncls_p = _round_up(ncls, LANE)
    b3_2d = bias_2d(b3)
    if ncls_p != ncls:
        w3 = jnp.pad(w3, ((0, 0), (0, ncls_p - ncls)))
        b3_2d = jnp.pad(b3_2d, ((0, 0), (0, ncls_p - ncls)))

    return EntityModelParams(
        w1=w1.astype(jnp.bfloat16), b1=bias_2d(b1),
        w2=w2.astype(jnp.bfloat16), b2=bias_2d(b2),
        w3=w3.astype(jnp.bfloat16), b3=b3_2d,
        num_classes=ncls,
    )


# ----------------------------------------------------------------------------------
# pallas_call wrapper
# ----------------------------------------------------------------------------------
_USE_PIPELINE_MODE = True   # cleared automatically if this JAX build rejects Buffered


def _build_and_run(x, p, bb, grid_steps, ncls_p, vmem_limit, buffered):
    B, in_dim = x.shape
    hid = p.w1.shape[1]
    hid2 = p.w2.shape[1]

    def bs(shape, imap, nbuf):
        if buffered:
            return pl.BlockSpec(shape, imap, pipeline_mode=pl.Buffered(nbuf))
        return pl.BlockSpec(shape, imap)

    in_specs = [
        bs((bb, in_dim), lambda i: (i, 0), 3),       # x tile: deeper input pipeline
        bs((in_dim, hid), lambda i: (0, 0), 1),      # W1 (resident, constant index)
        bs((1, hid), lambda i: (0, 0), 1),           # b1
        bs((hid, hid2), lambda i: (0, 0), 1),        # W2
        bs((1, hid2), lambda i: (0, 0), 1),          # b2
        bs((hid2, ncls_p), lambda i: (0, 0), 1),     # W3 (lane-padded)
        bs((1, ncls_p), lambda i: (0, 0), 1),        # b3 (lane-padded)
    ]

    flops = 2 * B * (in_dim * hid + hid * hid2 + hid2 * ncls_p)
    bytes_accessed = (x.size * x.dtype.itemsize
                      + (p.w1.size + p.w2.size + p.w3.size) * 2
                      + (p.b1.size + p.b2.size + p.b3.size) * 4
                      + B * ncls_p * 2)

    return pl.pallas_call(
        mlp_kernel,
        out_shape=jax.ShapeDtypeStruct((B, ncls_p), jnp.bfloat16),
        grid_spec=pltpu.PrefetchScalarGridSpec(
            num_scalar_prefetch=0,
            grid=(grid_steps,),
            in_specs=in_specs,
            out_specs=pl.BlockSpec((bb, ncls_p), lambda i: (i, 0)),
        ),
        compiler_params=pltpu.CompilerParams(
            dimension_semantics=("parallel",),
            vmem_limit_bytes=vmem_limit,
        ),
        cost_estimate=pl.CostEstimate(
            flops=flops, transcendentals=0, bytes_accessed=bytes_accessed),
    )(x, p.w1, p.b1, p.w2, p.b2, p.w3, p.b3)


def entity_model_forward(x, params: EntityModelParams, *, block_batch=1024):
    """Fused MLP forward.

    x: (B, input_dim), f32 (or bf16 -- callers can pass bf16 to halve x traffic).
    params: output of prepare_params() (converted once, reused across calls).
    Returns (B, num_classes) f32 logits.
    """
    global _USE_PIPELINE_MODE
    B, in_dim = x.shape
    ncls_p = params.w3.shape[1]

    # ---- batch tile selection -----------------------------------------------------
    bb = min(block_batch, B)
    if B >= 4 * 256:
        # Large batch: aim for >=4 grid steps so the "parallel" axis load-balances
        # across both v7x TensorCores (and keeps v6e/v5e pipelines busy).
        bb = min(bb, _round_up(pl.cdiv(B, 4), SUBLANE))
    if bb < B:
        bb = _round_up(bb, SUBLANE)      # tiles that split B must be sublane-aligned
    grid_steps = pl.cdiv(B, bb)          # ragged last tile is masked by Pallas

    # ---- VMEM limit from the actual footprint (not a blanket 48 MiB) ---------------
    x_tile_bytes = bb * in_dim * x.dtype.itemsize
    out_tile_bytes = bb * ncls_p * 2
    weight_bytes = ((params.w1.size + params.w2.size + params.w3.size) * 2
                    + (params.b1.size + params.b2.size + params.b3.size) * 4)
    footprint = 3 * x_tile_bytes + 2 * out_tile_bytes + 2 * weight_bytes
    vmem_limit = min(max(2 * footprint + (8 << 20), 16 << 20), 48 << 20)

    # ---- run (with cached fallback if pipeline_mode isn't supported) --------------
    buffered_first = _USE_PIPELINE_MODE and grid_steps > 1
    attempts = (True, False) if buffered_first else (False,)
    out = None
    for buffered in attempts:
        try:
            out = _build_and_run(x, params, bb, grid_steps, ncls_p, vmem_limit, buffered)
            break
        except Exception:
            if not buffered:
                raise
            _USE_PIPELINE_MODE = False    # remember: this build rejects Buffered specs

    # Slice off zero lane-padding and upcast the tiny logits slab to f32.
    return out[:, :params.num_classes].astype(jnp.float32)


# ----------------------------------------------------------------------------------
# Deterministic synthetic init (Kaiming-uniform-ish), PyTorch-style 1-D biases to
# exercise the bias-shape guard; weights stored (in, out).
# ----------------------------------------------------------------------------------
def init_params(key, input_dim, hidden_dim, num_classes):
    k1, k2, k3, k4, k5, k6 = jax.random.split(key, 6)

    def lin(kw, kb, fan_in, fan_out):
        bound = 1.0 / jnp.sqrt(fan_in)
        w = jax.random.uniform(kw, (fan_in, fan_out), jnp.float32, -bound, bound)
        b = jax.random.uniform(kb, (fan_out,), jnp.float32, -bound, bound)
        return w, b

    w1, b1 = lin(k1, k2, input_dim, hidden_dim)
    w2, b2 = lin(k3, k4, hidden_dim, hidden_dim // 2)
    w3, b3 = lin(k5, k6, hidden_dim // 2, num_classes)
    return w1, b1, w2, b2, w3, b3


if __name__ == "__main__":
    # Module defaults: input_dim=768, hidden_dim=256, num_classes=16; small batch.
    B, INPUT_DIM, HIDDEN_DIM, NUM_CLASSES = 8, 768, 256, 16

    key = jax.random.PRNGKey(0)
    kx, kp = jax.random.split(key)
    x = jax.random.normal(kx, (B, INPUT_DIM), dtype=jnp.float32)
    w1, b1, w2, b2, w3, b3 = init_params(kp, INPUT_DIM, HIDDEN_DIM, NUM_CLASSES)

    params = prepare_params(w1, b1, w2, b2, w3, b3)   # one-time conversion
    out = entity_model_forward(x, params)
    out = jax.block_until_ready(out)
    assert out.shape == (B, NUM_CLASSES)

    # Reference 1: mirrors the kernel's bf16-operand / f32-accumulate / bf16-store path.
    def ref_bf16_fwd(x, w1, b1, w2, b2, w3, b3):
        bf = jnp.bfloat16
        h = jnp.maximum(jnp.dot(x.astype(bf), w1.astype(bf),
                                preferred_element_type=jnp.float32) + b1, 0.0)
        h = jnp.maximum(jnp.dot(h.astype(bf), w2.astype(bf),
                                preferred_element_type=jnp.float32) + b2, 0.0)
        y = jnp.dot(h.astype(bf), w3.astype(bf),
                    preferred_element_type=jnp.float32) + b3
        return y.astype(bf).astype(jnp.float32)

    ref_bf16 = ref_bf16_fwd(x, w1, b1, w2, b2, w3, b3)
    assert jnp.allclose(out, ref_bf16, atol=2e-2, rtol=2e-2)

    # Reference 2: pure-f32 forward. Loose tolerance = intended bf16 quantization of
    # x/W operands and the stored logits, not numerical error.
    ref_f32 = jnp.maximum(x @ w1 + b1, 0.0)
    ref_f32 = jnp.maximum(ref_f32 @ w2 + b2, 0.0)
    ref_f32 = ref_f32 @ w3 + b3
    assert jnp.allclose(out, ref_f32, atol=1e-1, rtol=1e-1)

    # TODO(synk): training-mode dropout (p=0.3) not implemented; forward is eval-mode.
    # TODO(synk): token_patterns dict / predict() argmax are host-side logic, not kernel work.
    print("KERNEL_OK")
</pallas_src>

<mosaic_0001>
module attributes {stable_mosaic.version = 11 : i64} {
  func.func @mlp_kernel(%arg0: i32, %arg1: memref<8x768xf32, #tpu.memory_space<vmem>>, %arg2: memref<768x256xbf16, #tpu.memory_space<vmem>>, %arg3: memref<1x256xf32, #tpu.memory_space<vmem>>, %arg4: memref<256x128xbf16, #tpu.memory_space<vmem>>, %arg5: memref<1x128xf32, #tpu.memory_space<vmem>>, %arg6: memref<128x128xbf16, #tpu.memory_space<vmem>>, %arg7: memref<1x128xf32, #tpu.memory_space<vmem>>, %arg8: memref<8x128xbf16, #tpu.memory_space<vmem>>) attributes {dimension_semantics = [#tpu.dimension_semantics<parallel>], iteration_bounds = array<i64: 1>, scalar_prefetch = 0 : i64, scratch_operands = 0 : i64, tpu.core_type = #tpu.core_type<tc>, window_params = [{transform_indices = @transform_0, window_bounds = array<i64: 8, 768>}, {pipeline_mode = #tpu.pipeline_mode<synchronous>, transform_indices = @transform_1, window_bounds = array<i64: 768, 256>}, {pipeline_mode = #tpu.pipeline_mode<synchronous>, transform_indices = @transform_2, window_bounds = array<i64: 1, 256>}, {pipeline_mode = #tpu.pipeline_mode<synchronous>, transform_indices = @transform_3, window_bounds = array<i64: 256, 128>}, {pipeline_mode = #tpu.pipeline_mode<synchronous>, transform_indices = @transform_4, window_bounds = array<i64: 1, 128>}, {pipeline_mode = #tpu.pipeline_mode<synchronous>, transform_indices = @transform_5, window_bounds = array<i64: 128, 128>}, {pipeline_mode = #tpu.pipeline_mode<synchronous>, transform_indices = @transform_6, window_bounds = array<i64: 1, 128>}, {transform_indices = @transform_7, window_bounds = array<i64: 8, 128>}]} {
    %c0 = arith.constant 0 : index
    %c0_0 = arith.constant 0 : index
    %0 = vector.load %arg1[%c0, %c0_0] : memref<8x768xf32, #tpu.memory_space<vmem>>, vector<8x768xf32>
    %1 = arith.truncf %0 : vector<8x768xf32> to vector<8x768xbf16>
    %c0_1 = arith.constant 0 : index
    %c0_2 = arith.constant 0 : index
    %2 = vector.load %arg2[%c0_1, %c0_2] : memref<768x256xbf16, #tpu.memory_space<vmem>>, vector<768x256xbf16>
    %cst = arith.constant dense<0.000000e+00> : vector<8x256xf32>
    %3 = tpu.matmul %1, %2, %cst {dimension_numbers = #tpu.dot_dimension_numbers<[1], [0], [0], [1], [0, 0, 1, 1], [], []>} : vector<8x768xbf16>, vector<768x256xbf16>, vector<8x256xf32> -> vector<8x256xf32>
    %c0_3 = arith.constant 0 : index
    %c0_4 = arith.constant 0 : index
    %4 = vector.load %arg3[%c0_3, %c0_4] : memref<1x256xf32, #tpu.memory_space<vmem>>, vector<1x256xf32>
    %5 = vector.broadcast %4 : vector<1x256xf32> to vector<8x256xf32>
    %6 = arith.addf %3, %5 : vector<8x256xf32>
    %cst_5 = arith.constant 0.000000e+00 : f32
    %7 = vector.broadcast %cst_5 : f32 to vector<8x256xf32>
    %8 = arith.maximumf %6, %7 : vector<8x256xf32>
    %9 = arith.truncf %8 : vector<8x256xf32> to vector<8x256xbf16>
    %c0_6 = arith.constant 0 : index
    %c0_7 = arith.constant 0 : index
    %10 = vector.load %arg4[%c0_6, %c0_7] : memref<256x128xbf16, #tpu.memory_space<vmem>>, vector<256x128xbf16>
    %cst_8 = arith.constant dense<0.000000e+00> : vector<8x128xf32>
    %11 = tpu.matmul %9, %10, %cst_8 {dimension_numbers = #tpu.dot_dimension_numbers<[1], [0], [0], [1], [0, 0, 1, 1], [], []>} : vector<8x256xbf16>, vector<256x128xbf16>, vector<8x128xf32> -> vector<8x128xf32>
    %c0_9 = arith.constant 0 : index
    %c0_10 = arith.constant 0 : index
    %12 = vector.load %arg5[%c0_9, %c0_10] : memref<1x128xf32, #tpu.memory_space<vmem>>, vector<1x128xf32>
    %13 = vector.broadcast %12 : vector<1x128xf32> to vector<8x128xf32>
    %14 = arith.addf %11, %13 : vector<8x128xf32>
    %cst_11 = arith.constant 0.000000e+00 : f32
    %15 = vector.broadcast %cst_11 : f32 to vector<8x128xf32>
    %16 = arith.maximumf %14, %15 : vector<8x128xf32>
    %17 = arith.truncf %16 : vector<8x128xf32> to vector<8x128xbf16>
    %c0_12 = arith.constant 0 : index
    %c0_13 = arith.constant 0 : index
    %18 = vector.load %arg6[%c0_12, %c0_13] : memref<128x128xbf16, #tpu.memory_space<vmem>>, vector<128x128xbf16>
    %cst_14 = arith.constant dense<0.000000e+00> : vector<8x128xf32>
    %19 = tpu.matmul %17, %18, %cst_14 {dimension_numbers = #tpu.dot_dimension_numbers<[1], [0], [0], [1], [0, 0, 1, 1], [], []>} : vector<8x128xbf16>, vector<128x128xbf16>, vector<8x128xf32> -> vector<8x128xf32>
    %c0_15 = arith.constant 0 : index
    %c0_16 = arith.constant 0 : index
    %20 = vector.load %arg7[%c0_15, %c0_16] : memref<1x128xf32, #tpu.memory_space<vmem>>, vector<1x128xf32>
    %21 = vector.broadcast %20 : vector<1x128xf32> to vector<8x128xf32>
    %22 = arith.addf %19, %21 : vector<8x128xf32>
    %23 = arith.truncf %22 : vector<8x128xf32> to vector<8x128xbf16>
    %c0_17 = arith.constant 0 : index
    %c0_18 = arith.constant 0 : index
    %24 = vector.load %arg8[%c0_17, %c0_18] : memref<8x128xbf16, #tpu.memory_space<vmem>>, vector<8x128xbf16>
    tpu.vector_store %arg8[%c0_17, %c0_18], %23 {strides = array<i32>} : memref<8x128xbf16, #tpu.memory_space<vmem>>, vector<8x128xbf16>,
    return
  }
  func.func @transform_0(%arg0: i32) -> (i32, i32) {
    %c0_i32 = arith.constant 0 : i32
    %c0_i32_0 = arith.constant 0 : i32
    return %arg0, %c0_i32 : i32, i32
  }
  func.func @transform_1(%arg0: i32) -> (i32, i32) {
    %c0_i32 = arith.constant 0 : i32
    %c0_i32_0 = arith.constant 0 : i32
    %c0_i32_1 = arith.constant 0 : i32
    return %c0_i32, %c0_i32_0 : i32, i32
  }
  func.func @transform_2(%arg0: i32) -> (i32, i32) {
    %c0_i32 = arith.constant 0 : i32
    %c0_i32_0 = arith.constant 0 : i32
    %c0_i32_1 = arith.constant 0 : i32
    return %c0_i32, %c0_i32_0 : i32, i32
  }
  func.func @transform_3(%arg0: i32) -> (i32, i32) {
    %c0_i32 = arith.constant 0 : i32
    %c0_i32_0 = arith.constant 0 : i32
    %c0_i32_1 = arith.constant 0 : i32
    return %c0_i32, %c0_i32_0 : i32, i32
  }
  func.func @transform_4(%arg0: i32) -> (i32, i32) {
    %c0_i32 = arith.constant 0 : i32
    %c0_i32_0 = arith.constant 0 : i32
    %c0_i32_1 = arith.constant 0 : i32
    return %c0_i32, %c0_i32_0 : i32, i32
  }
  func.func @transform_5(%arg0: i32) -> (i32, i32) {
    %c0_i32 = arith.constant 0 : i32
    %c0_i32_0 = arith.constant 0 : i32
    %c0_i32_1 = arith.constant 0 : i32
    return %c0_i32, %c0_i32_0 : i32, i32
  }
  func.func @transform_6(%arg0: i32) -> (i32, i32) {
    %c0_i32 = arith.constant 0 : i32
    %c0_i32_0 = arith.constant 0 : i32
    %c0_i32_1 = arith.constant 0 : i32
    return %c0_i32, %c0_i32_0 : i32, i32
  }
  func.func @transform_7(%arg0: i32) -> (i32, i32) {
    %c0_i32 = arith.constant 0 : i32
    %c0_i32_0 = arith.constant 0 : i32
    return %arg0, %c0_i32 : i32, i32
  }
}

</mosaic_0001>

<bundles_post_ra>
// kernel: tpu_custom_call.1
= control target key start
LH: loop header
LB: loop body
LE: loop exit
PB: predicated region body
PF: predicated region fallthrough
CT: control target
= control target key end

     0   :  { %12 = vsyncpa [#allocation3], 0  ;;  %s1713_s0 = inlined_call_operand.hbm [shape: f32[8,768], index: 0, kind: input, shape index: {}]   ;;  %s1714_s1 = inlined_call_operand.hbm [shape: bf16[768,256], index: 1, kind: input, shape index: {}]   ;;  %s1715_s2 = inlined_call_operand.vmem [shape: f32[1,256], index: 2, kind: input, shape index: {}]   ;;  %s1716_s3 = inlined_call_operand.hbm [shape: bf16[256,128], index: 3, kind: input, shape index: {}]   ;;  %s1717_s4 = inlined_call_operand.vmem [shape: f32[1,128], index: 4, kind: input, shape index: {}]   ;;  %s1718_s5 = inlined_call_operand.hbm [shape: bf16[128,128], index: 5, kind: input, shape index: {}]   ;;  %s1719_s6 = inlined_call_operand.vmem [shape: f32[1,128], index: 6, kind: input, shape index: {}]   ;;  %s1720_s7 = inlined_call_operand.hbm [shape: bf16[8,128], index: 7, kind: output, shape index: {}]  }
   0x1   :  { %13 = vsyncpa [#allocation6], 0 }
   0x2   :  { %14 = vsyncpa [#allocation9], 0 }
   0x3   :  { %15 = vsyncpa [#allocation4], 0  ;;  %s1593_s24 = smov [#allocation5]   ;;  %s1475_s28 = scalar_lea.hbm %s1714_s1, 12288 }
   0x4   :  { %s31_s25 = sshll.u32 %s1593_s24, 4  ;;  %p1476_p0 = scmp.ne.s32.totalorder %s1714_s1, %s1475_s28  ;;  %s32_s25 = int_to_ptr.vmem [resolvable:$true] %s31_s25 }
   0x5   :  { %p1479_p1 = scmp.lt.u32.totalorder %s1475_s28, %s1714_s1 }
   0x7   :  { %p1481_p2 = pnand %p1479_p1, %p1476_p0 }
   0x9   :  { %1484 = shalt.err (!%p1481_p2)
}
   0xa   :  { %s1485_s10 = scalar_lea.vmem %s32_s25, 12288  ;;  %p1490_p4 = scmp.lt.s32.totalorder %s32_s25, %s32_s25 }
   0xb   :  { %p1486_p3 = scmp.ne.s32.totalorder %s32_s25, %s1485_s10  ;;  %p1491_p5 = scmp.lt.s32.totalorder %s1485_s10, %s1485_s10 }
   0xd   :  { %p1492_p6 = por %p1491_p5, %p1490_p4 }
   0xf   :  { %p1493_p7 = pnand %p1492_p6, %p1486_p3 }
  0x11   :  { %1496 = shalt.err (!%p1493_p7)
}
  0x12   :  { %s1594_s11 = smov 128   ;;  %s1595_s12 = smov 8  }
  0x13   :  { %37 = dma.hbm_to_vmem [thread:$0]  %s1714_s1, 12288, %s32_s25, [#allocation6], %s1594_s11, %s1594_s11, %s1595_s12  }
  0x14   :  { %s1596_s15 = smov [#allocation2]   ;;  %s1597_s17 = smov [#allocation7]  }
  0x15   :  { %s22_s16 = sshll.u32 %s1596_s15, 4  ;;  %s45_s18 = sshll.u32 %s1597_s17, 4  ;;  %s23_s16 = int_to_ptr.vmem [resolvable:$true] %s22_s16  ;;  %s46_s18 = int_to_ptr.vmem [resolvable:$true] %s45_s18 }
  0x16   :  { %s1497_s21 = scalar_lea.hbm %s1713_s0, 768 }
  0x17   :  { %p1498_p8 = scmp.ne.s32.totalorder %s1713_s0, %s1497_s21  ;;  %p1501_p9 = scmp.lt.u32.totalorder %s1497_s21, %s1713_s0 }
  0x19   :  { %p1503_p10 = pnand %p1501_p9, %p1498_p8 }
  0x1b   :  { %1506 = shalt.err (!%p1503_p10)
}
  0x1c   :  { %s1507_s1 = scalar_lea.vmem %s23_s16, 768  ;;  %p1512_p12 = scmp.lt.s32.totalorder %s23_s16, %s23_s16 }
  0x1d   :  { %p1508_p11 = scmp.ne.s32.totalorder %s23_s16, %s1507_s1  ;;  %p1513_p13 = scmp.lt.s32.totalorder %s1507_s1, %s1507_s1 }
  0x1f   :  { %p1514_p0 = por %p1513_p13, %p1512_p12 }
  0x21   :  { %p1515_p1 = pnand %p1514_p0, %p1508_p11 }
  0x23   :  { %1518 = shalt.err (!%p1515_p1)
}
  0x24   :  { %25 = dma.hbm_to_vmem [thread:$0]  %s1713_s0, 768, %s23_s16, [#allocation3]  }
  0x25   :  { %s1519_s30 = scalar_lea.hbm %s1716_s3, 2048 }
  0x26   :  { %p1520_p2 = scmp.ne.s32.totalorder %s1716_s3, %s1519_s30  ;;  %p1523_p3 = scmp.lt.u32.totalorder %s1519_s30, %s1716_s3 }
  0x28   :  { %p1525_p4 = pnand %p1523_p3, %p1520_p2 }
  0x2a   :  { %1528 = shalt.err (!%p1525_p4)
}
  0x2b   :  { %s1529_s12 = scalar_lea.vmem %s46_s18, 2048  ;;  %p1534_p6 = scmp.lt.s32.totalorder %s46_s18, %s46_s18 }
  0x2c   :  { %p1530_p5 = scmp.ne.s32.totalorder %s46_s18, %s1529_s12  ;;  %p1535_p7 = scmp.lt.s32.totalorder %s1529_s12, %s1529_s12 }
  0x2e   :  { %p1536_p8 = por %p1535_p7, %p1534_p6 }
  0x30   :  { %p1537_p9 = pnand %p1536_p8, %p1530_p5 }
  0x32   :  { %1540 = shalt.err (!%p1537_p9)
}
  0x33   :  { %s1598_s0 = smov 64   ;;  %s1599_s13 = smov 4  }
  0x34   :  { %51 = dma.hbm_to_vmem [thread:$0]  %s1716_s3, 2048, %s46_s18, [#allocation6], %s1598_s0, %s1598_s0, %s1599_s13  }
  0x35   :  { %s1600_s16 = smov [#allocation8]   ;;  %s1541_s21 = scalar_lea.hbm %s1718_s5, 1024 }
  0x36   :  { %s59_s17 = sshll.u32 %s1600_s16, 4  ;;  %p1542_p10 = scmp.ne.s32.totalorder %s1718_s5, %s1541_s21  ;;  %s60_s17 = int_to_ptr.vmem [resolvable:$true] %s59_s17 }
  0x37   :  { %p1545_p11 = scmp.lt.u32.totalorder %s1541_s21, %s1718_s5 }
  0x39   :  { %p1547_p12 = pnand %p1545_p11, %p1542_p10 }
  0x3b   :  { %1550 = shalt.err (!%p1547_p12)
}
  0x3c   :  { %s1551_s1 = scalar_lea.vmem %s60_s17, 1024  ;;  %p1556_p0 = scmp.lt.s32.totalorder %s60_s17, %s60_s17 }
  0x3d   :  { %p1552_p13 = scmp.ne.s32.totalorder %s60_s17, %s1551_s1  ;;  %p1557_p1 = scmp.lt.s32.totalorder %s1551_s1, %s1551_s1 }
  0x3f   :  { %p1558_p2 = por %p1557_p1, %p1556_p0 }
  0x41   :  { %p1559_p3 = pnand %p1558_p2, %p1552_p13 }
  0x43   :  { %1562 = shalt.err (!%p1559_p3)
}
  0x44   :  { %65 = dma.hbm_to_vmem [thread:$0]  %s1718_s5, 1024, %s60_s17, [#allocation9], %s1598_s0, %s1598_s0, %s1599_s13  }
  0x45   :  { %1585 = dma.done.wait [#allocation3], 768  }
  0x46   :  { %1586 = vsyncadd [#allocation3], 4294966528 }
  0x47   :  { %1587 = dma.done.wait [#allocation6], 14336  }
  0x48   :  { %1588 = vsyncadd [#allocation6], 4294952960 }
  0x49   :  { %1589 = dma.done.wait [#allocation9], 1024  }
  0x4a   :  { %1590 = vsyncadd [#allocation9], 4294966272  ;;  %v1307_v0 = vld [vmem:[#allocation5 + $0x104] ss:$8 sps:$4 sm:$0xff]   ;;  %v1309_v1 = vld [vmem:[#allocation5 + $0x100] ss:$8 sps:$4 sm:$0xff]  }
  0x4b   :  { %722 = vmatprep.subr.bf16.mxu0 %v1307_v0  ;;  %v1310_v2 = vld [vmem:[#allocation5 + $0x114] ss:$8 sps:$4 sm:$0xff]   ;;  %v1312_v3 = vld [vmem:[#allocation5 + $0x110] ss:$8 sps:$4 sm:$0xff]   ;;  %v1313_v4 = vld [vmem:[#allocation5 + $0x124] ss:$8 sps:$4 sm:$0xff]  }
  0x4c   :  { %723 = vmatpush1.bf16.msra.mxu0 %v1309_v1  ;;  %v1315_v5 = vld [vmem:[#allocation5 + $0x120] ss:$8 sps:$4 sm:$0xff]   ;;  %v1316_v6 = vld [vmem:[#allocation5 + $0x134] ss:$8 sps:$4 sm:$0xff]   ;;  %v1318_v7 = vld [vmem:[#allocation5 + $0x130] ss:$8 sps:$4 sm:$0xff]  }
  0x4d   :  { %724 = vmatprep.subr.bf16.mxu0 %v1310_v2  ;;  %v1319_v8 = vld [vmem:[#allocation5 + $0x144] ss:$8 sps:$4 sm:$0xff]   ;;  %v1321_v9 = vld [vmem:[#allocation5 + $0x140] ss:$8 sps:$4 sm:$0xff]   ;;  %v1322_v10 = vld [vmem:[#allocation5 + $0x154] ss:$8 sps:$4 sm:$0xff]  }
  0x4e   :  { %v1324_v11 = vld [vmem:[#allocation5 + $0x150] ss:$8 sps:$4 sm:$0xff]   ;;  %v1325_v12 = vld [vmem:[#allocation5 + $0x164] ss:$8 sps:$4 sm:$0xff]   ;;  %v1354_v14 = vld [vmem:[#allocation5] ss:$8 sps:$4 sm:$0xff]  }
  0x4f   :  { %v1352_v13 = vld [vmem:[#allocation5 + $0x4] ss:$8 sps:$4 sm:$0xff]   ;;  %v1327_v15 = vld [vmem:[#allocation5 + $0x160] ss:$8 sps:$4 sm:$0xff]   ;;  %v1328_v16 = vld [vmem:[#allocation5 + $0x174] ss:$8 sps:$4 sm:$0xff]  }
  0x50   :  { %725 = vmatpush1.bf16.msra.mxu0 %v1312_v3  ;;  %681 = vmatprep.subr.bf16.mxu1 %v1352_v13  ;;  %v1358_v17 = vld [vmem:[#allocation5 + $0x14] ss:$8 sps:$4 sm:$0xff]   ;;  %v1360_v18 = vld [vmem:[#allocation5 + $0x10] ss:$8 sps:$4 sm:$0xff]   ;;  %v84_v19 = vld [vmem:[#allocation2 + $0x18] sm:$0xff]  ;;  %vm1602_vm0 = vmmov 0  }
  0x51   :  { %726 = vmatprep.subr.bf16.mxu0 %v1313_v4  ;;  %682 = vmatpush1.bf16.msra.mxu1 %v1354_v14  ;;  %v1330_v20 = vld [vmem:[#allocation5 + $0x170] ss:$8 sps:$4 sm:$0xff]   ;;  %v90_v21 = vpack.c.bf16 %v84_v19, %v84_v19  ;;  %v1364_v22 = vld [vmem:[#allocation5 + $0x24] ss:$8 sps:$4 sm:$0xff]   ;;  %v1366_v23 = vld [vmem:[#allocation5 + $0x20] ss:$8 sps:$4 sm:$0xff]  }
  0x52   :  { %683 = vmatprep.subr.bf16.mxu1 %v1358_v17  ;;  %v1331_v24 = vld [vmem:[#allocation5 + $0x184] ss:$8 sps:$4 sm:$0xff]   ;;  %v1370_v25 = vld [vmem:[#allocation5 + $0x34] ss:$8 sps:$4 sm:$0xff]   ;;  %v1333_v26 = vld [vmem:[#allocation5 + $0x180] ss:$8 sps:$4 sm:$0xff]  }
  0x53   :  { %754 = vmatprep.mubr.bf16.mxu0 %v90_v21  ;;  %v1372_v27 = vld [vmem:[#allocation5 + $0x30] ss:$8 sps:$4 sm:$0xff]   ;;  %v1334_v28 = vld [vmem:[#allocation5 + $0x194] ss:$8 sps:$4 sm:$0xff]   ;;  %v1376_v29 = vld [vmem:[#allocation5 + $0x44] ss:$8 sps:$4 sm:$0xff]  }
  0x54   :  { %727 = vmatpush1.bf16.msra.mxu0 %v1315_v5  ;;  %v1336_v30 = vld [vmem:[#allocation5 + $0x190] ss:$8 sps:$4 sm:$0xff]   ;;  %v1378_v31 = vld [vmem:[#allocation5 + $0x40] ss:$8 sps:$4 sm:$0xff]   ;;  %v1337_v32 = vld [vmem:[#allocation5 + $0x1a4] ss:$8 sps:$4 sm:$0xff]  }
  0x55   :  { %728 = vmatprep.subr.bf16.mxu0 %v1316_v6  ;;  %684 = vmatpush1.bf16.msra.mxu1 %v1360_v18  ;;  %v1382_v33 = vld [vmem:[#allocation5 + $0x54] ss:$8 sps:$4 sm:$0xff]   ;;  %v1339_v34 = vld [vmem:[#allocation5 + $0x1a0] ss:$8 sps:$4 sm:$0xff]   ;;  %v1384_v35 = vld [vmem:[#allocation5 + $0x50] ss:$8 sps:$4 sm:$0xff]  }
  0x56   :  { %685 = vmatprep.subr.bf16.mxu1 %v1364_v22  ;;  %v1340_v36 = vld [vmem:[#allocation5 + $0x1b4] ss:$8 sps:$4 sm:$0xff]   ;;  %v1388_v37 = vld [vmem:[#allocation5 + $0x64] ss:$8 sps:$4 sm:$0xff]   ;;  %v1342_v38 = vld [vmem:[#allocation5 + $0x1b0] ss:$8 sps:$4 sm:$0xff]  }
  0x57   :  { %v1390_v39 = vld [vmem:[#allocation5 + $0x60] ss:$8 sps:$4 sm:$0xff]   ;;  %v1343_v40 = vld [vmem:[#allocation5 + $0x1c4] ss:$8 sps:$4 sm:$0xff]   ;;  %v1394_v41 = vld [vmem:[#allocation5 + $0x74] ss:$8 sps:$4 sm:$0xff]  }
  0x58   :  { %729 = vmatpush1.bf16.msra.mxu0 %v1318_v7  ;;  %v1345_v42 = vld [vmem:[#allocation5 + $0x1c0] ss:$8 sps:$4 sm:$0xff]   ;;  %v1396_v43 = vld [vmem:[#allocation5 + $0x70] ss:$8 sps:$4 sm:$0xff]   ;;  %v1346_v44 = vld [vmem:[#allocation5 + $0x1d4] ss:$8 sps:$4 sm:$0xff]  }
  0x59   :  { %730 = vmatprep.subr.bf16.mxu0 %v1319_v8  ;;  %686 = vmatpush1.bf16.msra.mxu1 %v1366_v23  ;;  %v1400_v45 = vld [vmem:[#allocation5 + $0x84] ss:$8 sps:$4 sm:$0xff]   ;;  %v1348_v46 = vld [vmem:[#allocation5 + $0x1d0] ss:$8 sps:$4 sm:$0xff]   ;;  %v1402_v47 = vld [vmem:[#allocation5 + $0x80] ss:$8 sps:$4 sm:$0xff]  }
  0x5a   :  { %687 = vmatprep.subr.bf16.mxu1 %v1370_v25  ;;  %v1349_v48 = vld [vmem:[#allocation5 + $0x1e4] ss:$8 sps:$4 sm:$0xff]   ;;  %v1406_v49 = vld [vmem:[#allocation5 + $0x94] ss:$8 sps:$4 sm:$0xff]   ;;  %v1351_v50 = vld [vmem:[#allocation5 + $0x1e0] ss:$8 sps:$4 sm:$0xff]  }
  0x5b   :  { %v1408_v51 = vld [vmem:[#allocation5 + $0x90] ss:$8 sps:$4 sm:$0xff]   ;;  %v1355_v52 = vld [vmem:[#allocation5 + $0x1f4] ss:$8 sps:$4 sm:$0xff]   ;;  %v1412_v53 = vld [vmem:[#allocation5 + $0xa4] ss:$8 sps:$4 sm:$0xff]  }
  0x5c   :  { %731 = vmatpush1.bf16.msra.mxu0 %v1321_v9  ;;  %v1357_v54 = vld [vmem:[#allocation5 + $0x1f0] ss:$8 sps:$4 sm:$0xff]   ;;  %v83_v55 = vld [vmem:[#allocation2 + $0x10] sm:$0xff]  ;;  %v1418_v58 = vld [vmem:[#allocation5 + $0xb4] ss:$8 sps:$4 sm:$0xff]   ;;  %s1603_s30 = smov [#allocation10]  }
  0x5d   :  { %732 = vmatprep.subr.bf16.mxu0 %v1322_v10  ;;  %688 = vmatpush1.bf16.msra.mxu1 %v1372_v27  ;;  %v1414_v56 = vld [vmem:[#allocation5 + $0xa0] ss:$8 sps:$4 sm:$0xff]   ;;  %v1363_v57 = vld [vmem:[#allocation5 + $0x204] ss:$8 sps:$4 sm:$0xff]   ;;  %v89_v60 = vpack.c.bf16 %v83_v55, %v83_v55  ;;  %v1369_v61 = vld [vmem:[#allocation5 + $0x214] ss:$8 sps:$4 sm:$0xff]  }
  0x5e   :  { %689 = vmatprep.subr.bf16.mxu1 %v1376_v29  ;;  %v1361_v59 = vld [vmem:[#allocation5 + $0x200] ss:$8 sps:$4 sm:$0xff]   ;;  %v1420_v62 = vld [vmem:[#allocation5 + $0xb0] ss:$8 sps:$4 sm:$0xff]   ;;  %v1424_v0 = vld [vmem:[#allocation5 + $0xc4] ss:$8 sps:$4 sm:$0xff]  }
  0x5f   :  { %v82_v63 = vld [vmem:[#allocation2 + $0x8] sm:$0xff]  ;;  %v1375_v4 = vld [vmem:[#allocation5 + $0x224] ss:$8 sps:$4 sm:$0xff]   ;;  %v1426_v6 = vld [vmem:[#allocation5 + $0xc0] ss:$8 sps:$4 sm:$0xff]   ;;  %s1104_s8 = sshll.u32 %s1603_s30, 4  ;;  %s1105_s8 = int_to_ptr.vmem [resolvable:$true] %s1104_s8 }
  0x60   :  { %733 = vmatpush1.bf16.msra.mxu0 %v1324_v11  ;;  %v88_v1 = vpack.c.bf16 %v82_v63, %v82_v63  ;;  %v1367_v2 = vld [vmem:[#allocation5 + $0x210] ss:$8 sps:$4 sm:$0xff]   ;;  %v1430_v7 = vld [vmem:[#allocation5 + $0xd4] ss:$8 sps:$4 sm:$0xff]   ;;  %v1373_v8 = vld [vmem:[#allocation5 + $0x220] ss:$8 sps:$4 sm:$0xff]   ;;  %p1568_p5 = scmp.lt.s32.totalorder %s1105_s8, %s1105_s8 }
  0x61   :  { %734 = vmatprep.subr.bf16.mxu0 %v1325_v12  ;;  %690 = vmatpush1.bf16.msra.mxu1 %v1378_v31  ;;  %v86_v3 = vld [vmem:[#allocation2 + $0x28] sm:$0xff]  ;;  %v1436_v11 = vld [vmem:[#allocation5 + $0xe4] ss:$8 sps:$4 sm:$0xff]   ;;  %v1438_v14 = vld [vmem:[#allocation5 + $0xe0] ss:$8 sps:$4 sm:$0xff]  }
  0x62   :  { %691 = vmatprep.subr.bf16.mxu1 %v1382_v33  ;;  %713 = vmatprep.mubr.bf16.mxu1 %v88_v1  ;;  %v92_v5 = vpack.c.bf16 %v86_v3, %v86_v3  ;;  %v1381_v9 = vld [vmem:[#allocation5 + $0x234] ss:$8 sps:$4 sm:$0xff]   ;;  %v1432_v10 = vld [vmem:[#allocation5 + $0xd0] ss:$8 sps:$4 sm:$0xff]   ;;  %v1387_v13 = vld [vmem:[#allocation5 + $0x244] ss:$8 sps:$4 sm:$0xff]   ;;  %v191_v1 = vlaneseq }
  0x63   :  { %v1379_v12 = vld [vmem:[#allocation5 + $0x230] ss:$8 sps:$4 sm:$0xff]   ;;  %v1393_v19 = vld [vmem:[#allocation5 + $0x254] ss:$8 sps:$4 sm:$0xff]   ;;  %v1452_v22 = vld [vmem:[#allocation7] sm:$0xff]  }
  0x64   :  { %735 = vmatpush1.bf16.msra.mxu0 %v1327_v15  ;;  %v1442_v15 = vld [vmem:[#allocation5 + $0xf4] ss:$8 sps:$4 sm:$0xff]   ;;  %v1444_v17 = vld [vmem:[#allocation5 + $0xf0] ss:$8 sps:$4 sm:$0xff]   ;;  %v1399_v23 = vld [vmem:[#allocation5 + $0x264] ss:$8 sps:$4 sm:$0xff]  }
  0x65   :  { %736 = vmatprep.subr.bf16.mxu0 %v1328_v16  ;;  %692 = vmatpush1.bf16.msra.mxu1 %v1384_v35  ;;  %v1385_v16 = vld [vmem:[#allocation5 + $0x240] ss:$8 sps:$4 sm:$0xff]   ;;  %v81_v18 = vld [vmem:[#allocation2] sm:$0xff]  ;;  %v1457_v33 = vld [vmem:[#allocation7 + $0x58] sm:$0xff]  }
  0x66   :  { %693 = vmatprep.subr.bf16.mxu1 %v1388_v37  ;;  %v1391_v21 = vld [vmem:[#allocation5 + $0x250] ss:$8 sps:$4 sm:$0xff]   ;;  %v1453_v25 = vld [vmem:[#allocation7 + $0x48] sm:$0xff]   ;;  %v1459_v37 = vld [vmem:[#allocation7 + $0x60] sm:$0xff]  }
  0x67   :  { %v1454_v27 = vld [vmem:[#allocation7 + $0x8] sm:$0xff]   ;;  %v1455_v29 = vld [vmem:[#allocation7 + $0x50] sm:$0xff]   ;;  %v1458_v35 = vld [vmem:[#allocation7 + $0x18] sm:$0xff]  }
  0x68   :  { %737 = vmatpush1.bf16.msra.mxu0 %v1330_v20  ;;  %v1451_v20 = vld [vmem:[#allocation7 + $0x40] sm:$0xff]   ;;  %v1456_v31 = vld [vmem:[#allocation7 + $0x10] sm:$0xff]   ;;  %v1462_v55 = vld [vmem:[#allocation7 + $0x28] sm:$0xff]  }
  0x69   :  { %738 = vmatprep.subr.bf16.mxu0 %v1331_v24  ;;  %694 = vmatpush1.bf16.msra.mxu1 %v1390_v39  ;;  %v87_v24 = vpack.c.bf16 %v81_v18, %v81_v18  ;;  %v1460_v39 = vld [vmem:[#allocation7 + $0x20] sm:$0xff]  }
  0x6a   :  { %695 = vmatprep.subr.bf16.mxu1 %v1394_v41  ;;  %v1421_v41 = vld [vmem:[#allocation5 + $0x2a0] ss:$8 sps:$4 sm:$0xff]  }
  0x6c   :  { %739 = vmatpush1.bf16.msra.mxu0 %v1333_v26  ;;  %v1397_v26 = vld [vmem:[#allocation5 + $0x260] ss:$8 sps:$4 sm:$0xff]  }
  0x6d   :  { %740 = vmatprep.subr.bf16.mxu0 %v1334_v28  ;;  %696 = vmatpush1.bf16.msra.mxu1 %v1396_v43  ;;  %v1405_v28 = vld [vmem:[#allocation5 + $0x274] ss:$8 sps:$4 sm:$0xff]   ;;  %v1427_v43 = vld [vmem:[#allocation5 + $0x2b0] ss:$8 sps:$4 sm:$0xff]  }
  0x6e   :  { %697 = vmatprep.subr.bf16.mxu1 %v1400_v45  ;;  %v1433_v45 = vld [vmem:[#allocation5 + $0x2c0] ss:$8 sps:$4 sm:$0xff]  }
  0x70   :  { %741 = vmatpush1.bf16.msra.mxu0 %v1336_v30  ;;  %v1403_v30 = vld [vmem:[#allocation5 + $0x270] ss:$8 sps:$4 sm:$0xff]  }
  0x71   :  { %742 = vmatprep.subr.bf16.mxu0 %v1337_v32  ;;  %698 = vmatpush1.bf16.msra.mxu1 %v1402_v47  ;;  %v1411_v32 = vld [vmem:[#allocation5 + $0x284] ss:$8 sps:$4 sm:$0xff]   ;;  %v1439_v47 = vld [vmem:[#allocation5 + $0x2d0] ss:$8 sps:$4 sm:$0xff]  }
  0x72   :  { %699 = vmatprep.subr.bf16.mxu1 %v1406_v49  ;;  %v1445_v49 = vld [vmem:[#allocation5 + $0x2e0] ss:$8 sps:$4 sm:$0xff]  }
  0x74   :  { %743 = vmatpush1.bf16.msra.mxu0 %v1339_v34  ;;  %v1409_v34 = vld [vmem:[#allocation5 + $0x280] ss:$8 sps:$4 sm:$0xff]  }
  0x75   :  { %744 = vmatprep.subr.bf16.mxu0 %v1340_v36  ;;  %700 = vmatpush1.bf16.msra.mxu1 %v1408_v51  ;;  %v1417_v36 = vld [vmem:[#allocation5 + $0x294] ss:$8 sps:$4 sm:$0xff]   ;;  %v1448_v51 = vld [vmem:[#allocation5 + $0x2f0] ss:$8 sps:$4 sm:$0xff]  }
  0x76   :  { %701 = vmatprep.subr.bf16.mxu1 %v1412_v53 }
  0x78   :  { %745 = vmatpush1.bf16.msra.mxu0 %v1342_v38  ;;  %v1415_v38 = vld [vmem:[#allocation5 + $0x290] ss:$8 sps:$4 sm:$0xff]  }
  0x79   :  { %746 = vmatprep.subr.bf16.mxu0 %v1343_v40  ;;  %702 = vmatpush1.bf16.msra.mxu1 %v1414_v56  ;;  %v1423_v40 = vld [vmem:[#allocation5 + $0x2a4] ss:$8 sps:$4 sm:$0xff]   ;;  %v1463_v56 = vld [vmem:[#allocation7 + $0x70] sm:$0xff]  }
  0x7a   :  { %703 = vmatprep.subr.bf16.mxu1 %v1418_v58  ;;  %v1465_v58 = vld [vmem:[#allocation7 + $0x78] sm:$0xff]  }
  0x7c   :  { %747 = vmatpush1.bf16.msra.mxu0 %v1345_v42  ;;  %v1429_v42 = vld [vmem:[#allocation5 + $0x2b4] ss:$8 sps:$4 sm:$0xff]  }
  0x7d   :  { %748 = vmatprep.subr.bf16.mxu0 %v1346_v44  ;;  %704 = vmatpush1.bf16.msra.mxu1 %v1420_v62  ;;  %v1435_v44 = vld [vmem:[#allocation5 + $0x2c4] ss:$8 sps:$4 sm:$0xff]  }
  0x7e   :  { %705 = vmatprep.subr.bf16.mxu1 %v1424_v0 }
  0x80   :  { %749 = vmatpush1.bf16.msra.mxu0 %v1348_v46  ;;  %v1441_v46 = vld [vmem:[#allocation5 + $0x2d4] ss:$8 sps:$4 sm:$0xff]  }
  0x81   :  { %750 = vmatprep.subr.bf16.mxu0 %v1349_v48  ;;  %706 = vmatpush1.bf16.msra.mxu1 %v1426_v6  ;;  %v1447_v48 = vld [vmem:[#allocation5 + $0x2e4] ss:$8 sps:$4 sm:$0xff]  }
  0x82   :  { %707 = vmatprep.subr.bf16.mxu1 %v1430_v7 }
  0x84   :  { %751 = vmatpush1.bf16.msra.mxu0 %v1351_v50  ;;  %v1450_v50 = vld [vmem:[#allocation5 + $0x2f4] ss:$8 sps:$4 sm:$0xff]  }
  0x85   :  { %752 = vmatprep.subr.bf16.mxu0 %v1355_v52  ;;  %708 = vmatpush1.bf16.msra.mxu1 %v1432_v10  ;;  %v85_v52 = vld [vmem:[#allocation2 + $0x20] sm:$0xff] }
  0x86   :  { %709 = vmatprep.subr.bf16.mxu1 %v1436_v11  ;;  %v91_v53 = vpack.c.bf16 %v85_v52, %v85_v52 }
  0x88   :  { %753 = vmatpush1.bf16.msra.mxu0 %v1357_v54  ;;  %v1461_v54 = vld [vmem:[#allocation7 + $0x68] sm:$0xff]  }
  0x89   :  { %763 = vmatprep.subr.bf16.mxu0 %v1363_v57  ;;  %710 = vmatpush1.bf16.msra.mxu1 %v1438_v14  ;;  %v1464_v57 = vld [vmem:[#allocation7 + $0x30] sm:$0xff]  }
  0x8a   :  { %711 = vmatprep.subr.bf16.mxu1 %v1442_v15 }
  0x8b   :  { %755 = vmatmul.mubr.bf16.vlgmr.msra.gmra.mrb[0].mxu0 %v89_v60  ;;  %v1601_v60 = vmov 0.0  }
  0x8c   :  { %764 = vmatpush1.bf16.msra.mxu0 %v1361_v59  ;;  %795 = vmatprep.mubr.bf16.mxu0 %v92_v5  ;;  %v1466_v59 = vld [vmem:[#allocation7 + $0x38] sm:$0xff]  }
  0x8d   :  { %765 = vmatprep.subr.bf16.mxu0 %v1369_v61  ;;  %712 = vmatpush1.bf16.msra.mxu1 %v1444_v17 }
  0x8e   :  { %1237 = vmatprep.subr.bf16.mxu1 %v1451_v20 }
  0x90   :  { %766 = vmatpush1.bf16.msra.mxu0 %v1367_v2  ;;  %714 = vmatmul.mubr.bf16.vlgmr.msra.gmra.mrb[0].mxu1 %v87_v24  ;;  %v192_v2 = vshrl.u32 %v191_v1, 7  ;;  %v1471_v24 = vld [vmem:[#allocation8 + $0x20] sm:$0xff]  }
  0x91   :  { %767 = vmatprep.subr.bf16.mxu0 %v1375_v4  ;;  %1238 = vmatpush3.bf16.msra.mxu1 %v1452_v22  ;;  %v189_v4 = vld [vmem:[%s1715_s2] sm:$0x3] }
  0x92   :  { %1239 = vmatprep.subr.bf16.mxu1 %v1453_v25  ;;  %v193_v3 = vsub.s32 0, %v192_v2  ;;  %v197_v5 = vsub.s32 1, %v192_v2  ;;  %v1469_v22 = vld [vmem:[#allocation8 + $0x10] sm:$0xff]   ;;  %v1472_v25 = vld [vmem:[#allocation8 + $0x28] sm:$0xff]  }
  0x94   :  { %768 = vmatpush1.bf16.msra.mxu0 %v1373_v8  ;;  %v194_v6 = vrot.slane %v189_v4, %v193_v3  ;;  %v198_v7 = vrot.slane %v189_v4, %v197_v5 }
  0x95   :  { %769 = vmatprep.subr.bf16.mxu0 %v1381_v9  ;;  %1240 = vmatpush3.bf16.msra.mxu1 %v1454_v27  ;;  %v1474_v27 = vld [vmem:[#allocation8 + $0x38] sm:$0xff]  }
  0x96   :  { %1241 = vmatprep.subr.bf16.mxu1 %v1455_v29  ;;  %v1211_v29 = vld [vmem:[%s1717_s4] ss:$0 sm:$0xff]  ;;  %s1563_s4 = scalar_lea.vmem %s1105_s8, 64 }
  0x97   :  { %p1564_p4 = scmp.ne.s32.totalorder %s1105_s8, %s1563_s4  ;;  %p1569_p6 = scmp.lt.s32.totalorder %s1563_s4, %s1563_s4 }
  0x98   :  { %770 = vmatpush1.bf16.msra.mxu0 %v1379_v12 }
  0x99   :  { %771 = vmatprep.subr.bf16.mxu0 %v1387_v13  ;;  %1242 = vmatpush3.bf16.msra.mxu1 %v1456_v31  ;;  %p1570_p7 = por %p1569_p6, %p1568_p5 }
  0x9a   :  { %1243 = vmatprep.subr.bf16.mxu1 %v1457_v33 }
  0x9b   :  { %p1571_p8 = pnand %p1570_p7, %p1564_p4 }
  0x9c   :  { %772 = vmatpush1.bf16.msra.mxu0 %v1385_v16 }
  0x9d   :  { %773 = vmatprep.subr.bf16.mxu0 %v1393_v19  ;;  %1244 = vmatpush3.bf16.msra.mxu1 %v1458_v35  ;;  %v1467_v19 = vld [vmem:[#allocation8] sm:$0xff]  }
  0x9e   :  { %1245 = vmatprep.subr.bf16.mxu1 %v1459_v37  ;;  %v1228_v37 = vld [vmem:[%s1719_s6] ss:$0 sm:$0xff] }
  0xa0   :  { %774 = vmatpush1.bf16.msra.mxu0 %v1391_v21  ;;  %v1468_v21 = vld [vmem:[#allocation8 + $0x8] sm:$0xff]  }
  0xa1   :  { %775 = vmatprep.subr.bf16.mxu0 %v1399_v23  ;;  %1246 = vmatpush3.bf16.msra.mxu1 %v1460_v39  ;;  %v1470_v23 = vld [vmem:[#allocation8 + $0x18] sm:$0xff]  }
  0xa2   :  { %1247 = vmatprep.subr.bf16.mxu1 %v1461_v54 }
  0xa4   :  { %776 = vmatpush1.bf16.msra.mxu0 %v1397_v26  ;;  %v1473_v26 = vld [vmem:[#allocation8 + $0x30] sm:$0xff]  }
  0xa5   :  { %777 = vmatprep.subr.bf16.mxu0 %v1405_v28  ;;  %1248 = vmatpush3.bf16.msra.mxu1 %v1462_v55 }
  0xa6   :  { %1249 = vmatprep.subr.bf16.mxu1 %v1463_v56 }
  0xa8   :  { %778 = vmatpush1.bf16.msra.mxu0 %v1403_v30 }
  0xa9   :  { %779 = vmatprep.subr.bf16.mxu0 %v1411_v32  ;;  %1250 = vmatpush3.bf16.msra.mxu1 %v1464_v57 }
  0xaa   :  { %1251 = vmatprep.subr.bf16.mxu1 %v1465_v58 }
  0xac   :  { %780 = vmatpush1.bf16.msra.mxu0 %v1409_v34 }
  0xad   :  { %781 = vmatprep.subr.bf16.mxu0 %v1417_v36  ;;  %1252 = vmatpush3.bf16.msra.mxu1 %v1466_v59 }
  0xae   :  { %1268 = vmatprep.subr.bf16.mxu1 %v1601_v60 }
  0xb0   :  { %782 = vmatpush1.bf16.msra.mxu0 %v1415_v38 }
  0xb1   :  { %783 = vmatprep.subr.bf16.mxu0 %v1423_v40 }
  0xb4   :  { %784 = vmatpush1.bf16.msra.mxu0 %v1421_v41 }
  0xb5   :  { %785 = vmatprep.subr.bf16.mxu0 %v1429_v42 }
  0xb8   :  { %786 = vmatpush1.bf16.msra.mxu0 %v1427_v43 }
  0xb9   :  { %787 = vmatprep.subr.bf16.mxu0 %v1435_v44 }
  0xbc   :  { %788 = vmatpush1.bf16.msra.mxu0 %v1433_v45 }
  0xbd   :  { %789 = vmatprep.subr.bf16.mxu0 %v1441_v46 }
  0xc0   :  { %790 = vmatpush1.bf16.msra.mxu0 %v1439_v47 }
  0xc1   :  { %791 = vmatprep.subr.bf16.mxu0 %v1447_v48 }
  0xc4   :  { %792 = vmatpush1.bf16.msra.mxu0 %v1445_v49 }
  0xc5   :  { %793 = vmatprep.subr.bf16.mxu0 %v1450_v50 }
  0xc8   :  { %794 = vmatpush1.bf16.msra.mxu0 %v1448_v51 }
  0xcb   :  { %796 = vmatmul.mubr.bf16.vlgmr.msra.gmra.mrb[0].mxu0 %v91_v53 }
 0x163   :  { %v715_v61 = vpop.f32.mrb[0].mxu1 }
 0x164   :  { %v717_v62 = vpop.f32.mrb[1].mxu1  ;;  %v716_v8 = vadd.f32 %v715_v61, %v194_v6 }
 0x165   :  { %v719_v63 = vpop.f32.mrb[2].mxu1  ;;  %v718_v9 = vadd.f32 %v717_v62, %v198_v7 }
 0x166   :  { %v720_v0 = vpop.f32.mrb[3].mxu1 }
 0x19e   :  { %v797_v10 = vpop.f32.mrb[0].mxu0 }
 0x19f   :  { %v1289_v11 = vadd.f32 %v797_v10, %v716_v8  ;;  %v799_v12 = vpop.f32.mrb[1].mxu0 }
 0x1a0   :  { %v1291_v13 = vadd.f32 %v799_v12, %v718_v9  ;;  %v801_v14 = vpop.f32.mrb[2].mxu0 }
 0x1a1   :  { %v804_v15 = vmax.f32 %v1289_v11, 0.0  ;;  %v802_v16 = vpop.f32.mrb[3].mxu0 }
 0x1a2   :  { %v805_v17 = vmax.f32 %v1291_v13, 0.0 }
 0x1a3   :  { %v806_v20 = vpack.c.bf16 %v804_v15, %v804_v15 }
 0x1a4   :  { %v807_v18 = vpack.c.bf16 %v805_v17, %v805_v17 }
 0x1a6   :  { %975 = vmatprep.mubr.bf16.mxu1 %v807_v18 }
 0x1a7   :  { %976 = vmatmul.mubr.bf16.vlgmr.msra.gmra.mrb[4].mxu1 %v806_v20 }
 0x1a8   :  { %1269 = vmatpush3.bf16.msra.mxu1 %v1467_v19  ;;  %1284 = vmatprep.mubr.msk.bf16.mxu1 %vm1602_vm0, %v1601_v60 }
 0x1a9   :  { %1270 = vmatprep.subr.bf16.mxu1 %v1601_v60 }
 0x1ac   :  { %1271 = vmatpush3.bf16.msra.mxu1 %v1468_v21 }
 0x1ad   :  { %1272 = vmatprep.subr.bf16.mxu1 %v1601_v60 }
 0x1b0   :  { %1273 = vmatpush3.bf16.msra.mxu1 %v1469_v22 }
 0x1b1   :  { %1274 = vmatprep.subr.bf16.mxu1 %v1601_v60 }
 0x1b4   :  { %1275 = vmatpush3.bf16.msra.mxu1 %v1470_v23 }
 0x1b5   :  { %1276 = vmatprep.subr.bf16.mxu1 %v1601_v60 }
 0x1b8   :  { %1277 = vmatpush3.bf16.msra.mxu1 %v1471_v24 }
 0x1b9   :  { %1278 = vmatprep.subr.bf16.mxu1 %v1601_v60 }
 0x1bc   :  { %1279 = vmatpush3.bf16.msra.mxu1 %v1472_v25 }
 0x1bd   :  { %1280 = vmatprep.subr.bf16.mxu1 %v1601_v60 }
 0x1c0   :  { %1281 = vmatpush3.bf16.msra.mxu1 %v1473_v26 }
 0x1c1   :  { %1282 = vmatprep.subr.bf16.mxu1 %v1601_v60 }
 0x1c4   :  { %1283 = vmatpush3.bf16.msra.mxu1 %v1474_v27 }
 0x27a   :  { %v1253_v28 = vpop.f32.mrb[4].mxu1 }
 0x27b   :  { %v1254_v30 = vpop.f32.mrb[5].mxu1 }
 0x27c   :  { %v1255_v31 = vadd.f32 %v1254_v30, %v1253_v28  ;;  %v1256_v32 = vpop.f32.mrb[6].mxu1 }
 0x27d   :  { %v1257_v33 = vpop.f32.mrb[7].mxu1 }
 0x27e   :  { %v978_v34 = vadd.f32 %v1255_v31, %v1211_v29 }
 0x280   :  { %v983_v35 = vmax.f32 %v978_v34, 0.0 }
 0x282   :  { %v984_v36 = vpack.c.bf16 %v983_v35, %v983_v35 }
 0x284   :  { %1285 = vmatmul.mubr.bf16.vlgmr.msra.gmra.mrb[8].mxu1 %v984_v36 }
 0x357   :  { %v1090_v38 = vpop.f32.mrb[8].mxu1 }
 0x358   :  { %v1091_v39 = vadd.f32 %v1228_v37, %v1090_v38  ;;  %v1286_v40 = vpop.f32.mrb[9].mxu1 }
 0x359   :  { %v1093_v41 = vpop.f32.mrb[10].mxu1 }
 0x35a   :  { %v1096_v42 = vpack.c.bf16 %v1091_v39, %v1091_v39  ;;  %v1287_v43 = vpop.f32.mrb[11].mxu1 }
 0x35c   :  { %1097 = vst [vmem:[#allocation10] sm:$0xf] %v1096_v42 }
 0x35d   :  { %1574 = shalt.err (!%p1571_p8)
}
 0x35e   :  { %s1575_s6 = scalar_lea.hbm %s1720_s7, 64 }
 0x35f   :  { %p1576_p9 = scmp.ne.s32.totalorder %s1720_s7, %s1575_s6  ;;  %p1579_p10 = scmp.lt.u32.totalorder %s1575_s6, %s1720_s7 }
 0x361   :  { %p1581_p11 = pnand %p1579_p10, %p1576_p9 }
 0x363   :  { %1584 = shalt.err (!%p1581_p11)
}
 0x364   :  { %1107 = dma.vmem_to_hbm [thread:$0]  %s1105_s8, 64, %s1720_s7, [#allocation4]  }
 0x365   :  { %1591 = dma.done.wait [#allocation4], 64  }
 0x366   :  { %1592 = vsyncadd [#allocation4], 4294967232 }
 0x367   :  { %1111 = vsyncpa [#allocation3], 1 }
 0x368   :  { %1112 = vsyncpa [#allocation6], 1 }
 0x369   :  { %1113 = vsyncpa [#allocation9], 1 }
 0x36a   :  { %1114 = vsyncpa [#allocation4], 1 }

</bundles_post_ra>
